<compile_context>
chip_gen: v7x
topology: tpu7x:2x2x1
jax: 0.10.0
libtpu: 0.0.40
codegen_flags: <defaults>
</compile_context>

<pallas_src>
import functools

import jax
import jax.numpy as jnp
from jax.experimental import pallas as pl
from jax.experimental.pallas import tpu as pltpu


# ------------------------------ tiling helper -------------------------------

def _pick_tile(total, cap=512):
    """Largest row tile that divides `total`, is a multiple of 8 and <= cap.
    Returns `total` (single block) when it is already small."""
    if total <= cap:
        return total
    for d in range(cap, 0, -1):
        if total % d == 0 and d % 8 == 0:
            return d
    return total


# ------------------------------ Pallas kernels ------------------------------

def _down_kernel(a_ref, w_ref, o_ref, *, alpha):
    """o = ReLU( LeakyReLU(a) @ w ).  ReLU epilogue feeds the transposed conv."""
    a = a_ref[...].astype(jnp.float32)
    a = jnp.where(a > 0, a, alpha * a)                       # LeakyReLU(0.2)
    h = jnp.dot(a.astype(jnp.bfloat16), w_ref[...],
                preferred_element_type=jnp.float32)          # MXU, bf16 in / f32 acc
    o_ref[...] = jnp.maximum(h, 0.0).astype(o_ref.dtype)     # ReLU (up path) epilogue


def down_conv_lrelu_relu(d_patches, wd, *, alpha=0.2, tile_m=None):
    m, k = d_patches.shape
    k2, n = wd.shape
    assert k == k2
    tile_m = tile_m or _pick_tile(m)
    assert m % tile_m == 0, (m, tile_m)
    return pl.pallas_call(
        functools.partial(_down_kernel, alpha=alpha),
        out_shape=jax.ShapeDtypeStruct((m, n), jnp.bfloat16),
        grid=(m // tile_m,),
        in_specs=[
            pl.BlockSpec((tile_m, k), lambda i: (i, 0)),
            pl.BlockSpec((k, n), lambda i: (0, 0)),
        ],
        out_specs=pl.BlockSpec((tile_m, n), lambda i: (i, 0)),
        compiler_params=pltpu.CompilerParams(dimension_semantics=("parallel",)),
    )(d_patches, wd)


def _up_kernel(a_ref, w_ref, y_ref, st_ref):
    """Per-parity ConvT sub-matmul + per-tile BatchNorm partial statistics."""
    y = jnp.dot(a_ref[...], w_ref[...], preferred_element_type=jnp.float32)
    y_ref[...] = y
    st_ref[0:1, :] = jnp.sum(y, axis=0, keepdims=True)        # sum
    st_ref[1:2, :] = jnp.sum(y * y, axis=0, keepdims=True)    # sum of squares


def up_convt_with_stats(u_patches, wu_par, *, tile_m=None):
    p4, m, k = u_patches.shape
    p4b, k2, co = wu_par.shape
    assert p4 == 4 and p4b == 4 and k == k2
    tile_m = tile_m or _pick_tile(m)
    assert m % tile_m == 0, (m, tile_m)
    n_m = m // tile_m
    return pl.pallas_call(
        _up_kernel,
        out_shape=(
            jax.ShapeDtypeStruct((4, m, co), jnp.float32),        # raw (pre-BN) output
            jax.ShapeDtypeStruct((4, n_m, 2, co), jnp.float32),   # per-tile [sum, sumsq]
        ),
        grid=(4, n_m),
        in_specs=[
            pl.BlockSpec((None, tile_m, k), lambda p, i: (p, i, 0)),
            pl.BlockSpec((None, k, co), lambda p, i: (p, 0, 0)),
        ],
        out_specs=(
            pl.BlockSpec((None, tile_m, co), lambda p, i: (p, i, 0)),
            pl.BlockSpec((None, None, 2, co), lambda p, i: (p, i, 0, 0)),
        ),
        compiler_params=pltpu.CompilerParams(
            dimension_semantics=("parallel", "parallel")),
    )(u_patches, wu_par)


def _bn_concat_kernel(y_ref, x_ref, sc_ref, sh_ref, o_ref):
    """Apply BatchNorm affine and write [x | BN(y)] into the channel-split output."""
    cin = x_ref.shape[-1]
    yb = y_ref[...] * sc_ref[...] + sh_ref[...]
    o_ref[:, :cin] = x_ref[...]
    o_ref[:, cin:] = yb


def bn_concat(y_raw, x_par, scale, shift, *, tile_m=None):
    p4, m, co = y_raw.shape
    p4b, m2, cin = x_par.shape
    assert p4 == 4 and p4b == 4 and m == m2
    ctot = cin + co
    tile_m = tile_m or _pick_tile(m)
    assert m % tile_m == 0, (m, tile_m)
    return pl.pallas_call(
        _bn_concat_kernel,
        out_shape=jax.ShapeDtypeStruct((4, m, ctot), jnp.float32),
        grid=(4, m // tile_m),
        in_specs=[
            pl.BlockSpec((None, tile_m, co), lambda p, i: (p, i, 0)),
            pl.BlockSpec((None, tile_m, cin), lambda p, i: (p, i, 0)),
            pl.BlockSpec((1, co), lambda p, i: (0, 0)),
            pl.BlockSpec((1, co), lambda p, i: (0, 0)),
        ],
        out_specs=pl.BlockSpec((None, tile_m, ctot), lambda p, i: (p, i, 0)),
        compiler_params=pltpu.CompilerParams(
            dimension_semantics=("parallel", "parallel")),
    )(y_raw, x_par, scale, shift)


# --------------------------------- JAX glue ----------------------------------

def unet_innermost_forward(x_nchw, params):
    """Innermost UnetSkipConnectionBlock forward. x_nchw: [N, input_nc, H, W] f32."""
    n, cin, h, w = x_nchw.shape
    assert h % 2 == 0 and w % 2 == 0
    hi, wi = h // 2, w // 2
    mp = n * hi * wi                       # rows at the bottleneck resolution
    m_tot = n * h * w                      # rows normalized by BatchNorm

    x_nhwc = jnp.transpose(x_nchw, (0, 2, 3, 1))            # f32, reused for the skip half

    # ---- down: LeakyReLU(0.2) -> Conv2d(cin, inner, 4, s=2, p=1, bias=False) [+ up ReLU]
    w_down = params["w_down"]                                # [inner, cin, 4, 4]
    inner = w_down.shape[0]
    xpad = jnp.pad(x_nhwc.astype(jnp.bfloat16), ((0, 0), (1, 1), (1, 1), (0, 0)))
    cols = []
    for kh in range(4):
        for kw in range(4):
            cols.append(xpad[:, kh:kh + 2 * hi:2, kw:kw + 2 * wi:2, :])
    d_patches = jnp.concatenate(cols, axis=-1).reshape(mp, 16 * cin)          # bf16
    wd = jnp.transpose(w_down, (2, 3, 1, 0)).reshape(16 * cin, inner).astype(jnp.bfloat16)
    hdn = down_conv_lrelu_relu(d_patches, wd)                # [mp, inner] bf16, already ReLU'd
    hdn = hdn.reshape(n, hi, wi, inner)

    # ---- up: ConvTranspose2d(inner, outer, 4, s=2, p=1, bias=False), parity-decomposed.
    # out[2i+dy, 2j+dx] = sum_{a,b in {0,1}} hp[i+dy+a, j+dx+b] . W[:, :, (1-dy)+2(1-a), (1-dx)+2(1-b)]
    # with hp = zero-pad(hdn, 1).  Each parity is a dense 2x2 matmul (K = 4*inner).
    w_up = params["w_up"]                                    # [inner, outer, 4, 4]
    co = w_up.shape[1]
    hp = jnp.pad(hdn, ((0, 0), (1, 1), (1, 1), (0, 0)))      # bf16
    pats, wus = [], []
    for dy in (0, 1):
        for dx in (0, 1):
            taps = [hp[:, dy + a: dy + a + hi, dx + b: dx + b + wi, :]
                    for a in (0, 1) for b in (0, 1)]
            pats.append(jnp.concatenate(taps, axis=-1).reshape(mp, 4 * inner))
            wus.append(jnp.concatenate(
                [w_up[:, :, (1 - dy) + 2 * (1 - a), (1 - dx) + 2 * (1 - b)]
                 for a in (0, 1) for b in (0, 1)], axis=0))
    u_patches = jnp.stack(pats, axis=0)                      # [4, mp, 4*inner] bf16
    wu_par = jnp.stack(wus, axis=0).astype(jnp.bfloat16)     # [4, 4*inner, co]

    y_raw, stats = up_convt_with_stats(u_patches, wu_par)    # f32

    # ---- BatchNorm2d(outer): batch statistics from in-kernel partial sums
    # (training-mode forward; biased variance; running stats not modeled).
    tot = jnp.sum(stats, axis=(0, 1))                        # [2, co]
    mean = tot[0] / m_tot
    var = tot[1] / m_tot - mean * mean
    inv = jax.lax.rsqrt(var + 1e-5)
    scale = (params["bn_gamma"] * inv).reshape(1, co).astype(jnp.float32)
    shift = (params["bn_beta"] - mean * params["bn_gamma"] * inv).reshape(1, co).astype(jnp.float32)

    # ---- fused BN-apply + skip concat (x written into the first cin channels)
    x_par = (x_nhwc.reshape(n, hi, 2, wi, 2, cin)
             .transpose(2, 4, 0, 1, 3, 5).reshape(4, mp, cin))
    out_par = bn_concat(y_raw, x_par, scale, shift)          # [4, mp, cin+co] f32

    # ---- parity-major -> NCHW (single XLA layout pass)
    ctot = cin + co
    out = (out_par.reshape(2, 2, n, hi, wi, ctot)
           .transpose(2, 5, 3, 0, 4, 1).reshape(n, ctot, h, w))
    return out


# ----------------------------------- main ------------------------------------

if __name__ == "__main__":
    # Innermost block: outer_nc = 4, inner_nc = 8, input_nc defaults to outer_nc.
    outer_nc, inner_nc = 4, 8
    N, H, W = 2, 16, 16

    key = jax.random.PRNGKey(0)
    kx, kd, ku, kg, kb = jax.random.split(key, 5)

    x = jax.random.normal(kx, (N, outer_nc, H, W), dtype=jnp.float32)

    params = {
        # Conv2d(input_nc=outer_nc, inner_nc, 4, 2, 1, bias=False) weight
        "w_down": 0.02 * jax.random.normal(kd, (inner_nc, outer_nc, 4, 4), jnp.float32),
        # ConvTranspose2d(inner_nc, outer_nc, 4, 2, 1, bias=False) weight
        "w_up": 0.02 * jax.random.normal(ku, (inner_nc, outer_nc, 4, 4), jnp.float32),
        # BatchNorm2d(outer_nc) affine params
        "bn_gamma": 1.0 + 0.1 * jax.random.normal(kg, (outer_nc,), jnp.float32),
        "bn_beta": 0.1 * jax.random.normal(kb, (outer_nc,), jnp.float32),
    }

    out = jax.jit(unet_innermost_forward)(x, params)
    out = jax.block_until_ready(out)

    assert out.shape == (N, 2 * outer_nc, H, W), out.shape
    assert bool(jnp.all(jnp.isfinite(out)))
    # skip branch must pass the input through untouched
    assert bool(jnp.allclose(out[:, :outer_nc], x))

    print("KERNEL_OK")
</pallas_src>

<mosaic_0001>
module attributes {stable_mosaic.version = 11 : i64} {
  func.func @_down_kernel(%arg0: i32, %arg1: memref<128x64xbf16, #tpu.memory_space<vmem>>, %arg2: memref<64x8xbf16, #tpu.memory_space<vmem>>, %arg3: memref<128x8xbf16, #tpu.memory_space<vmem>>) attributes {dimension_semantics = [#tpu.dimension_semantics<parallel>], iteration_bounds = array<i64: 1>, scalar_prefetch = 0 : i64, scratch_operands = 0 : i64, tpu.core_type = #tpu.core_type<tc>, window_params = [{transform_indices = @transform_0, window_bounds = array<i64: 128, 64>}, {pipeline_mode = #tpu.pipeline_mode<synchronous>, transform_indices = @transform_1, window_bounds = array<i64: 64, 8>}, {transform_indices = @transform_2, window_bounds = array<i64: 128, 8>}]} {
    %c0 = arith.constant 0 : index
    %c0_0 = arith.constant 0 : index
    %0 = vector.load %arg1[%c0, %c0_0] : memref<128x64xbf16, #tpu.memory_space<vmem>>, vector<128x64xbf16>
    %1 = arith.extf %0 : vector<128x64xbf16> to vector<128x64xf32>
    %cst = arith.constant 0.000000e+00 : f32
    %2 = vector.broadcast %cst : f32 to vector<128x64xf32>
    %3 = arith.cmpf ogt, %1, %2 : vector<128x64xf32>
    %cst_1 = arith.constant 2.000000e-01 : f32
    %4 = vector.broadcast %cst_1 : f32 to vector<128x64xf32>
    %5 = arith.mulf %4, %1 : vector<128x64xf32>
    %6 = arith.select %3, %1, %5 : vector<128x64xi1>, vector<128x64xf32>
    %7 = arith.truncf %6 : vector<128x64xf32> to vector<128x64xbf16>
    %c0_2 = arith.constant 0 : index
    %c0_3 = arith.constant 0 : index
    %8 = vector.load %arg2[%c0_2, %c0_3] : memref<64x8xbf16, #tpu.memory_space<vmem>>, vector<64x8xbf16>
    %cst_4 = arith.constant dense<0.000000e+00> : vector<128x8xf32>
    %9 = tpu.matmul %7, %8, %cst_4 {dimension_numbers = #tpu.dot_dimension_numbers<[1], [0], [0], [1], [0, 0, 1, 1], [], []>} : vector<128x64xbf16>, vector<64x8xbf16>, vector<128x8xf32> -> vector<128x8xf32>
    %cst_5 = arith.constant 0.000000e+00 : f32
    %10 = vector.broadcast %cst_5 : f32 to vector<128x8xf32>
    %11 = arith.maximumf %9, %10 : vector<128x8xf32>
    %12 = arith.truncf %11 : vector<128x8xf32> to vector<128x8xbf16>
    %c0_6 = arith.constant 0 : index
    %c0_7 = arith.constant 0 : index
    %13 = vector.load %arg3[%c0_6, %c0_7] : memref<128x8xbf16, #tpu.memory_space<vmem>>, vector<128x8xbf16>
    tpu.vector_store %arg3[%c0_6, %c0_7], %12 {strides = array<i32>} : memref<128x8xbf16, #tpu.memory_space<vmem>>, vector<128x8xbf16>,
    return
  }
  func.func @transform_0(%arg0: i32) -> (i32, i32) {
    %c0_i32 = arith.constant 0 : i32
    %c0_i32_0 = arith.constant 0 : i32
    return %arg0, %c0_i32 : i32, i32
  }
  func.func @transform_1(%arg0: i32) -> (i32, i32) {
    %c0_i32 = arith.constant 0 : i32
    %c0_i32_0 = arith.constant 0 : i32
    %c0_i32_1 = arith.constant 0 : i32
    return %c0_i32, %c0_i32_0 : i32, i32
  }
  func.func @transform_2(%arg0: i32) -> (i32, i32) {
    %c0_i32 = arith.constant 0 : i32
    %c0_i32_0 = arith.constant 0 : i32
    return %arg0, %c0_i32 : i32, i32
  }
}

module attributes {stable_mosaic.version = 11 : i64} {
  func.func @_up_kernel(%arg0: i32, %arg1: i32, %arg2: memref<1x128x32xbf16, #tpu.memory_space<vmem>>, %arg3: memref<1x32x4xbf16, #tpu.memory_space<vmem>>, %arg4: memref<1x128x4xf32, #tpu.memory_space<vmem>>, %arg5: memref<1x1x2x4xf32, #tpu.memory_space<vmem>>) attributes {dimension_semantics = [#tpu.dimension_semantics<parallel>, #tpu.dimension_semantics<parallel>], iteration_bounds = array<i64: 4, 1>, scalar_prefetch = 0 : i64, scratch_operands = 0 : i64, tpu.core_type = #tpu.core_type<tc>, window_params = [{transform_indices = @transform_0, window_bounds = array<i64: 1, 128, 32>}, {transform_indices = @transform_1, window_bounds = array<i64: 1, 32, 4>}, {transform_indices = @transform_2, window_bounds = array<i64: 1, 128, 4>}, {transform_indices = @transform_3, window_bounds = array<i64: 1, 1, 2, 4>}]} {
    %c0 = arith.constant 0 : index
    %c0_0 = arith.constant 0 : index
    %c0_1 = arith.constant 0 : index
    %0 = vector.load %arg2[%c0, %c0_0, %c0_1] : memref<1x128x32xbf16, #tpu.memory_space<vmem>>, vector<1x128x32xbf16>
    %1 = vector.shape_cast %0 : vector<1x128x32xbf16> to vector<128x32xbf16>
    %c0_2 = arith.constant 0 : index
    %c0_3 = arith.constant 0 : index
    %c0_4 = arith.constant 0 : index
    %2 = vector.load %arg3[%c0_2, %c0_3, %c0_4] : memref<1x32x4xbf16, #tpu.memory_space<vmem>>, vector<1x32x4xbf16>
    %3 = vector.shape_cast %2 : vector<1x32x4xbf16> to vector<32x4xbf16>
    %cst = arith.constant dense<0.000000e+00> : vector<128x4xf32>
    %4 = tpu.matmul %1, %3, %cst {dimension_numbers = #tpu.dot_dimension_numbers<[1], [0], [0], [1], [0, 0, 1, 1], [], []>} : vector<128x32xbf16>, vector<32x4xbf16>, vector<128x4xf32> -> vector<128x4xf32>
    %c0_5 = arith.constant 0 : index
    %c0_6 = arith.constant 0 : index
    %c0_7 = arith.constant 0 : index
    %5 = vector.load %arg4[%c0_5, %c0_6, %c0_7] : memref<1x128x4xf32, #tpu.memory_space<vmem>>, vector<1x128x4xf32>
    %6 = vector.shape_cast %5 : vector<1x128x4xf32> to vector<128x4xf32>
    %7 = vector.shape_cast %4 : vector<128x4xf32> to vector<1x128x4xf32>
    tpu.vector_store %arg4[%c0_5, %c0_6, %c0_7], %7 {strides = array<i32>} : memref<1x128x4xf32, #tpu.memory_space<vmem>>, vector<1x128x4xf32>,
    %cst_8 = arith.constant dense<0.000000e+00> : vector<4xf32>
    %8 = vector.multi_reduction <add>, %4, %cst_8 [0] : vector<128x4xf32> to vector<4xf32>
    %9 = vector.shape_cast %8 : vector<4xf32> to vector<1x4xf32>
    %c0_9 = arith.constant 0 : index
    %c0_10 = arith.constant 0 : index
    %c0_11 = arith.constant 0 : index
    %c0_12 = arith.constant 0 : index
    %10 = vector.load %arg5[%c0_9, %c0_10, %c0_11, %c0_12] : memref<1x1x2x4xf32, #tpu.memory_space<vmem>>, vector<1x1x1x4xf32>
    %11 = vector.shape_cast %10 : vector<1x1x1x4xf32> to vector<1x4xf32>
    %12 = vector.shape_cast %9 : vector<1x4xf32> to vector<1x1x1x4xf32>
    tpu.vector_store %arg5[%c0_9, %c0_10, %c0_11, %c0_12], %12 {strides = array<i32>} : memref<1x1x2x4xf32, #tpu.memory_space<vmem>>, vector<1x1x1x4xf32>,
    %13 = arith.mulf %4, %4 : vector<128x4xf32>
    %cst_13 = arith.constant dense<0.000000e+00> : vector<4xf32>
    %14 = vector.multi_reduction <add>, %13, %cst_13 [0] : vector<128x4xf32> to vector<4xf32>
    %15 = vector.shape_cast %14 : vector<4xf32> to vector<1x4xf32>
    %c0_14 = arith.constant 0 : index
    %c0_15 = arith.constant 0 : index
    %c1 = arith.constant 1 : index
    %c0_16 = arith.constant 0 : index
    %16 = vector.load %arg5[%c0_14, %c0_15, %c1, %c0_16] : memref<1x1x2x4xf32, #tpu.memory_space<vmem>>, vector<1x1x1x4xf32>
    %17 = vector.shape_cast %16 : vector<1x1x1x4xf32> to vector<1x4xf32>
    %18 = vector.shape_cast %15 : vector<1x4xf32> to vector<1x1x1x4xf32>
    tpu.vector_store %arg5[%c0_14, %c0_15, %c1, %c0_16], %18 {strides = array<i32>} : memref<1x1x2x4xf32, #tpu.memory_space<vmem>>, vector<1x1x1x4xf32>,
    return
  }
  func.func @transform_0(%arg0: i32, %arg1: i32) -> (i32, i32, i32) {
    %c0_i32 = arith.constant 0 : i32
    %c0_i32_0 = arith.constant 0 : i32
    return %arg0, %arg1, %c0_i32 : i32, i32, i32
  }
  func.func @transform_1(%arg0: i32, %arg1: i32) -> (i32, i32, i32) {
    %c0_i32 = arith.constant 0 : i32
    %c0_i32_0 = arith.constant 0 : i32
    %c0_i32_1 = arith.constant 0 : i32
    return %arg0, %c0_i32, %c0_i32_0 : i32, i32, i32
  }
  func.func @transform_2(%arg0: i32, %arg1: i32) -> (i32, i32, i32) {
    %c0_i32 = arith.constant 0 : i32
    %c0_i32_0 = arith.constant 0 : i32
    return %arg0, %arg1, %c0_i32 : i32, i32, i32
  }
  func.func @transform_3(%arg0: i32, %arg1: i32) -> (i32, i32, i32, i32) {
    %c0_i32 = arith.constant 0 : i32
    %c0_i32_0 = arith.constant 0 : i32
    %c0_i32_1 = arith.constant 0 : i32
    return %arg0, %arg1, %c0_i32, %c0_i32_0 : i32, i32, i32, i32
  }
}

module attributes {stable_mosaic.version = 11 : i64} {
  func.func @_bn_concat_kernel(%arg0: i32, %arg1: i32, %arg2: memref<1x128x4xf32, #tpu.memory_space<vmem>>, %arg3: memref<1x128x4xf32, #tpu.memory_space<vmem>>, %arg4: memref<1x4xf32, #tpu.memory_space<vmem>>, %arg5: memref<1x4xf32, #tpu.memory_space<vmem>>, %arg6: memref<1x128x8xf32, #tpu.memory_space<vmem>>) attributes {dimension_semantics = [#tpu.dimension_semantics<parallel>, #tpu.dimension_semantics<parallel>], iteration_bounds = array<i64: 4, 1>, scalar_prefetch = 0 : i64, scratch_operands = 0 : i64, tpu.core_type = #tpu.core_type<tc>, window_params = [{transform_indices = @transform_0, window_bounds = array<i64: 1, 128, 4>}, {transform_indices = @transform_1, window_bounds = array<i64: 1, 128, 4>}, {pipeline_mode = #tpu.pipeline_mode<synchronous>, transform_indices = @transform_2, window_bounds = array<i64: 1, 4>}, {pipeline_mode = #tpu.pipeline_mode<synchronous>, transform_indices = @transform_3, window_bounds = array<i64: 1, 4>}, {transform_indices = @transform_4, window_bounds = array<i64: 1, 128, 8>}]} {
    %c0 = arith.constant 0 : index
    %c0_0 = arith.constant 0 : index
    %c0_1 = arith.constant 0 : index
    %0 = vector.load %arg2[%c0, %c0_0, %c0_1] : memref<1x128x4xf32, #tpu.memory_space<vmem>>, vector<1x128x4xf32>
    %1 = vector.shape_cast %0 : vector<1x128x4xf32> to vector<128x4xf32>
    %c0_2 = arith.constant 0 : index
    %c0_3 = arith.constant 0 : index
    %2 = vector.load %arg4[%c0_2, %c0_3] : memref<1x4xf32, #tpu.memory_space<vmem>>, vector<1x4xf32>
    %3 = vector.broadcast %2 : vector<1x4xf32> to vector<128x4xf32>
    %4 = arith.mulf %1, %3 : vector<128x4xf32>
    %c0_4 = arith.constant 0 : index
    %c0_5 = arith.constant 0 : index
    %5 = vector.load %arg5[%c0_4, %c0_5] : memref<1x4xf32, #tpu.memory_space<vmem>>, vector<1x4xf32>
    %6 = vector.broadcast %5 : vector<1x4xf32> to vector<128x4xf32>
    %7 = arith.addf %4, %6 : vector<128x4xf32>
    %c0_6 = arith.constant 0 : index
    %c0_7 = arith.constant 0 : index
    %c0_8 = arith.constant 0 : index
    %8 = vector.load %arg3[%c0_6, %c0_7, %c0_8] : memref<1x128x4xf32, #tpu.memory_space<vmem>>, vector<1x128x4xf32>
    %9 = vector.shape_cast %8 : vector<1x128x4xf32> to vector<128x4xf32>
    %c0_9 = arith.constant 0 : index
    %c0_10 = arith.constant 0 : index
    %c0_11 = arith.constant 0 : index
    %10 = vector.load %arg6[%c0_9, %c0_10, %c0_11] : memref<1x128x8xf32, #tpu.memory_space<vmem>>, vector<1x128x4xf32>
    %11 = vector.shape_cast %10 : vector<1x128x4xf32> to vector<128x4xf32>
    %12 = vector.shape_cast %9 : vector<128x4xf32> to vector<1x128x4xf32>
    tpu.vector_store %arg6[%c0_9, %c0_10, %c0_11], %12 {strides = array<i32>} : memref<1x128x8xf32, #tpu.memory_space<vmem>>, vector<1x128x4xf32>,
    %c0_12 = arith.constant 0 : index
    %c0_13 = arith.constant 0 : index
    %c4 = arith.constant 4 : index
    %13 = vector.load %arg6[%c0_12, %c0_13, %c4] : memref<1x128x8xf32, #tpu.memory_space<vmem>>, vector<1x128x4xf32>
    %14 = vector.shape_cast %13 : vector<1x128x4xf32> to vector<128x4xf32>
    %15 = vector.shape_cast %7 : vector<128x4xf32> to vector<1x128x4xf32>
    tpu.vector_store %arg6[%c0_12, %c0_13, %c4], %15 {strides = array<i32>} : memref<1x128x8xf32, #tpu.memory_space<vmem>>, vector<1x128x4xf32>,
    return
  }
  func.func @transform_0(%arg0: i32, %arg1: i32) -> (i32, i32, i32) {
    %c0_i32 = arith.constant 0 : i32
    %c0_i32_0 = arith.constant 0 : i32
    return %arg0, %arg1, %c0_i32 : i32, i32, i32
  }
  func.func @transform_1(%arg0: i32, %arg1: i32) -> (i32, i32, i32) {
    %c0_i32 = arith.constant 0 : i32
    %c0_i32_0 = arith.constant 0 : i32
    return %arg0, %arg1, %c0_i32 : i32, i32, i32
  }
  func.func @transform_2(%arg0: i32, %arg1: i32) -> (i32, i32) {
    %c0_i32 = arith.constant 0 : i32
    %c0_i32_0 = arith.constant 0 : i32
    %c0_i32_1 = arith.constant 0 : i32
    return %c0_i32, %c0_i32_0 : i32, i32
  }
  func.func @transform_3(%arg0: i32, %arg1: i32) -> (i32, i32) {
    %c0_i32 = arith.constant 0 : i32
    %c0_i32_0 = arith.constant 0 : i32
    %c0_i32_1 = arith.constant 0 : i32
    return %c0_i32, %c0_i32_0 : i32, i32
  }
  func.func @transform_4(%arg0: i32, %arg1: i32) -> (i32, i32, i32) {
    %c0_i32 = arith.constant 0 : i32
    %c0_i32_0 = arith.constant 0 : i32
    return %arg0, %arg1, %c0_i32 : i32, i32, i32
  }
}

</mosaic_0001>

<bundles_post_ra>
// kernel: unet_innermost_forward.3
= control target key start
LH: loop header
LB: loop body
LE: loop exit
PB: predicated region body
PF: predicated region fallthrough
CT: control target
= control target key end

     0   :  { %vm132_vm0 = vcmask 523264   ;;  %s611_s1 = inlined_call_operand.vmem [shape: bf16[64,8], index: 1, kind: input, shape index: {}]   ;;  %s612_s0 = inlined_call_operand.vmem [shape: bf16[128,64], index: 0, kind: input, shape index: {}]   ;;  %s613_s2 = inlined_call_operand.vmem [shape: bf16[128,8], index: 2, kind: output, shape index: {}]  }
   0x1   :  { %v482_v0 = vld [vmem:[%s611_s1] sm:$0xff]   ;;  %v483_v1 = vld [vmem:[%s611_s1 + $0x8] sm:$0xff]   ;;  %v484_v2 = vld [vmem:[%s611_s1 + $0x10] sm:$0xff]  }
   0x2   :  { %450 = vmatprep.subr.bf16.mxu0 %v482_v0  ;;  %474 = vmatprep.subr.bf16.mxu1 %v482_v0  ;;  %v400_v3 = vld [vmem:[%s612_s0] sm:$0xff]   ;;  %v431_v5 = vld [vmem:[%s612_s0 + $0x8] sm:$0xff]   ;;  %v485_v11 = vld [vmem:[%s611_s1 + $0x18] sm:$0xff]  }
   0x3   :  { %451 = vmatpush3.bf16.msra.mxu0 %v482_v0  ;;  %478 = vmatpush3.bf16.msra.mxu1 %v482_v0  ;;  %v434_v4 = vld [vmem:[%s612_s0 + $0x20] sm:$0xff]   ;;  %v401_v6 = vunpack.c.l.bf16 %v400_v3  ;;  %v402_v7 = vunpack.c.h.bf16 %v400_v3  ;;  %v435_v10 = vld [vmem:[%s612_s0 + $0x28] sm:$0xff]   ;;  %v405_v12 = vunpack.c.l.bf16 %v431_v5  ;;  %v406_v13 = vunpack.c.h.bf16 %v431_v5  ;;  %v432_v22 = vld [vmem:[%s612_s0 + $0x10] sm:$0xff]  }
   0x4   :  { %452 = vmatprep.subr.bf16.mxu0 %v483_v1  ;;  %475 = vmatprep.subr.bf16.mxu1 %v483_v1  ;;  %v417_v8 = vunpack.c.l.bf16 %v434_v4  ;;  %v418_v9 = vunpack.c.h.bf16 %v434_v4  ;;  %v421_v14 = vunpack.c.l.bf16 %v435_v10  ;;  %v422_v15 = vunpack.c.h.bf16 %v435_v10  ;;  %v436_v27 = vld [vmem:[%s612_s0 + $0x30] sm:$0xff]   ;;  %v433_v41 = vld [vmem:[%s612_s0 + $0x18] sm:$0xff]  }
   0x5   :  { %vm44_vm1 = vcmp.gt.f32.partialorder %v401_v6, 0.0  ;;  %vm45_vm2 = vcmp.gt.f32.partialorder %v402_v7, 0.0  ;;  %v60_v16 = vmul.f32 0.2, %v401_v6  ;;  %v61_v17 = vmul.f32 0.2, %v402_v7 }
   0x6   :  { %vm52_vm3 = vcmp.gt.f32.partialorder %v417_v8, 0.0  ;;  %vm53_vm4 = vcmp.gt.f32.partialorder %v418_v9, 0.0  ;;  %v68_v18 = vmul.f32 0.2, %v417_v8  ;;  %v69_v19 = vmul.f32 0.2, %v418_v9 }
   0x7   :  { %453 = vmatpush3.bf16.msra.mxu0 %v483_v1  ;;  %479 = vmatpush3.bf16.msra.mxu1 %v483_v1  ;;  %v76_v20 = vsel %vm44_vm1, %v401_v6, %v60_v16  ;;  %v77_v21 = vsel %vm45_vm2, %v402_v7, %v61_v17  ;;  %vm46_vm5 = vcmp.gt.f32.partialorder %v405_v12, 0.0  ;;  %vm47_vm6 = vcmp.gt.f32.partialorder %v406_v13, 0.0  ;;  %v437_v45 = vld [vmem:[%s612_s0 + $0x38] sm:$0xff]  }
   0x8   :  { %454 = vmatprep.subr.bf16.mxu0 %v484_v2  ;;  %476 = vmatprep.subr.bf16.mxu1 %v484_v2  ;;  %v92_v23 = vpack.c.bf16 %v77_v21, %v76_v20  ;;  %v84_v24 = vsel %vm52_vm3, %v417_v8, %v68_v18  ;;  %v85_v25 = vsel %vm53_vm4, %v418_v9, %v69_v19  ;;  %v62_v26 = vmul.f32 0.2, %v405_v12 }
   0x9   :  { %v96_v28 = vpack.c.bf16 %v85_v25, %v84_v24  ;;  %v63_v29 = vmul.f32 0.2, %v406_v13  ;;  %vm54_vm7 = vcmp.gt.f32.partialorder %v421_v14, 0.0  ;;  %vm55_vm8 = vcmp.gt.f32.partialorder %v422_v15, 0.0 }
   0xa   :  { %v78_v30 = vsel %vm46_vm5, %v405_v12, %v62_v26  ;;  %v70_v31 = vmul.f32 0.2, %v421_v14  ;;  %v71_v32 = vmul.f32 0.2, %v422_v15  ;;  %v409_v33 = vunpack.c.l.bf16 %v432_v22  ;;  %458 = vmatprep.mubr.msk.bf16.mxu0 %vm132_vm0, %v92_v23 }
   0xb   :  { %455 = vmatpush3.bf16.msra.mxu0 %v484_v2  ;;  %480 = vmatpush3.bf16.msra.mxu1 %v484_v2  ;;  %v79_v34 = vsel %vm47_vm6, %v406_v13, %v63_v29  ;;  %v410_v35 = vunpack.c.h.bf16 %v432_v22  ;;  %v425_v36 = vunpack.c.l.bf16 %v436_v27  ;;  %v426_v37 = vunpack.c.h.bf16 %v436_v27 }
   0xc   :  { %456 = vmatprep.subr.bf16.mxu0 %v485_v11  ;;  %477 = vmatprep.subr.bf16.mxu1 %v485_v11  ;;  %v93_v38 = vpack.c.bf16 %v79_v34, %v78_v30  ;;  %v86_v39 = vsel %vm54_vm7, %v421_v14, %v70_v31  ;;  %v87_v40 = vsel %vm55_vm8, %v422_v15, %v71_v32  ;;  %vm48_vm9 = vcmp.gt.f32.partialorder %v409_v33, 0.0 }
   0xd   :  { %466 = vmatprep.mubr.msk.bf16.mxu1 %vm132_vm0, %v96_v28  ;;  %v97_v42 = vpack.c.bf16 %v87_v40, %v86_v39  ;;  %vm49_vm10 = vcmp.gt.f32.partialorder %v410_v35, 0.0  ;;  %v64_v43 = vmul.f32 0.2, %v409_v33  ;;  %v65_v44 = vmul.f32 0.2, %v410_v35 }
   0xe   :  { %vm56_vm11 = vcmp.gt.f32.partialorder %v425_v36, 0.0  ;;  %vm57_vm12 = vcmp.gt.f32.partialorder %v426_v37, 0.0  ;;  %v72_v46 = vmul.f32 0.2, %v425_v36  ;;  %v73_v47 = vmul.f32 0.2, %v426_v37 }
   0xf   :  { %457 = vmatpush3.bf16.msra.mxu0 %v485_v11  ;;  %481 = vmatpush3.bf16.msra.mxu1 %v485_v11  ;;  %v80_v48 = vsel %vm48_vm9, %v409_v33, %v64_v43  ;;  %v81_v49 = vsel %vm49_vm10, %v410_v35, %v65_v44  ;;  %v413_v50 = vunpack.c.l.bf16 %v433_v41  ;;  %v414_v51 = vunpack.c.h.bf16 %v433_v41 }
  0x10   :  { %v94_v52 = vpack.c.bf16 %v81_v49, %v80_v48  ;;  %v88_v53 = vsel %vm56_vm11, %v425_v36, %v72_v46  ;;  %v89_v54 = vsel %vm57_vm12, %v426_v37, %v73_v47  ;;  %v429_v55 = vunpack.c.l.bf16 %v437_v45 }
  0x11   :  { %v98_v56 = vpack.c.bf16 %v89_v54, %v88_v53  ;;  %vm50_vm13 = vcmp.gt.f32.partialorder %v413_v50, 0.0  ;;  %vm51_vm14 = vcmp.gt.f32.partialorder %v414_v51, 0.0  ;;  %v66_v57 = vmul.f32 0.2, %v413_v50 }
  0x12   :  { %459 = vmatmul.mubr.msk.bf16.vlgmr.msra.gmra.mrb[0].mxu0 %vm132_vm0, %v93_v38  ;;  %467 = vmatmul.mubr.msk.bf16.vlgmr.msra.gmra.mrb[0].mxu1 %vm132_vm0, %v97_v42  ;;  %v67_v58 = vmul.f32 0.2, %v414_v51  ;;  %v430_v59 = vunpack.c.h.bf16 %v437_v45  ;;  %vm58_vm15 = vcmp.gt.f32.partialorder %v429_v55, 0.0  ;;  %v74_v60 = vmul.f32 0.2, %v429_v55 }
  0x13   :  { %462 = vmatprep.mubr.msk.bf16.mxu0 %vm132_vm0, %v94_v52  ;;  %470 = vmatprep.mubr.msk.bf16.mxu1 %vm132_vm0, %v98_v56  ;;  %v82_v61 = vsel %vm50_vm13, %v413_v50, %v66_v57  ;;  %vm334_vm2 = vcmask 60416  }
  0x14   :  { %v83_v62 = vsel %vm51_vm14, %v414_v51, %v67_v58  ;;  %vm59_vm1 = vcmp.gt.f32.partialorder %v430_v59, 0.0  ;;  %v75_v63 = vmul.f32 0.2, %v430_v59  ;;  %v90_v0 = vsel %vm58_vm15, %v429_v55, %v74_v60 }
  0x15   :  { %v95_v1 = vpack.c.bf16 %v83_v62, %v82_v61 }
  0x16   :  { %v91_v2 = vsel %vm59_vm1, %v430_v59, %v75_v63 }
  0x17   :  { %v99_v3 = vpack.c.bf16 %v91_v2, %v90_v0 }
  0x1a   :  { %463 = vmatmul.mubr.msk.bf16.gmra.mrb[4].mxu0 %vm132_vm0, %v95_v1  ;;  %471 = vmatmul.mubr.msk.bf16.gmra.mrb[4].mxu1 %vm132_vm0, %v99_v3 }
  0xe5   :  { %v460_v4 = vpop.f32.mrb[0].mxu0  ;;  %v468_v5 = vpop.f32.mrb[0].mxu1 }
  0xe6   :  { %v256_v6 = vmax.f32 %v460_v4, 0.0  ;;  %v264_v7 = vmax.f32 %v468_v5, 0.0  ;;  %v191_v8 = vpop.f32.mrb[1].mxu0  ;;  %v223_v9 = vpop.f32.mrb[1].mxu1 }
  0xe7   :  { %v254_v10 = vmax.f32 %v191_v8, 0.0  ;;  %v262_v11 = vmax.f32 %v223_v9, 0.0  ;;  %v461_v12 = vpop.f32.mrb[2].mxu0  ;;  %v469_v13 = vpop.f32.mrb[2].mxu1 }
  0xe8   :  { %v385_v14 = vpack.c.bf16 %v256_v6, %v256_v6  ;;  %v393_v15 = vpack.c.bf16 %v264_v7, %v264_v7  ;;  %v257_v16 = vmax.f32 %v461_v12, 0.0  ;;  %v265_v17 = vmax.f32 %v469_v13, 0.0  ;;  %v194_v18 = vpop.f32.mrb[3].mxu0  ;;  %v226_v19 = vpop.f32.mrb[3].mxu1 }
  0xe9   :  { %v383_v20 = vpack.c.bf16 %v254_v10, %v254_v10  ;;  %v391_v21 = vpack.c.bf16 %v262_v11, %v262_v11  ;;  %v255_v22 = vmax.f32 %v194_v18, 0.0  ;;  %v263_v23 = vmax.f32 %v226_v19, 0.0 }
  0xea   :  { %337 = vst.msk [vmem:[%s613_s2 + $0x8] sm:$0xf] %vm334_vm2, %v385_v14  ;;  %345 = vst.msk [vmem:[%s613_s2 + $0x28] sm:$0xf] %vm334_vm2, %v393_v15  ;;  %v386_v24 = vpack.c.bf16 %v257_v16, %v257_v16  ;;  %v394_v25 = vpack.c.bf16 %v265_v17, %v265_v17 }
  0xeb   :  { %335 = vst.msk [vmem:[%s613_s2] sm:$0xf] %vm334_vm2, %v383_v20  ;;  %343 = vst.msk [vmem:[%s613_s2 + $0x20] sm:$0xf] %vm334_vm2, %v391_v21  ;;  %v384_v26 = vpack.c.bf16 %v255_v22, %v255_v22  ;;  %v392_v27 = vpack.c.bf16 %v263_v23, %v263_v23 }
  0xec   :  { %338 = vst.msk [vmem:[%s613_s2 + $0xc] sm:$0xf] %vm334_vm2, %v386_v24  ;;  %346 = vst.msk [vmem:[%s613_s2 + $0x2c] sm:$0xf] %vm334_vm2, %v394_v25 }
  0xed   :  { %336 = vst.msk [vmem:[%s613_s2 + $0x4] sm:$0xf] %vm334_vm2, %v384_v26  ;;  %344 = vst.msk [vmem:[%s613_s2 + $0x24] sm:$0xf] %vm334_vm2, %v392_v27  ;;  %v464_v28 = vpop.f32.mrb[4].mxu0  ;;  %v472_v30 = vpop.f32.mrb[4].mxu1 }
  0xee   :  { %v260_v29 = vmax.f32 %v464_v28, 0.0  ;;  %v207_v31 = vpop.f32.mrb[5].mxu0  ;;  %v268_v32 = vmax.f32 %v472_v30, 0.0  ;;  %v239_v34 = vpop.f32.mrb[5].mxu1 }
  0xef   :  { %v258_v33 = vmax.f32 %v207_v31, 0.0  ;;  %v465_v35 = vpop.f32.mrb[6].mxu0  ;;  %v266_v37 = vmax.f32 %v239_v34, 0.0  ;;  %v473_v39 = vpop.f32.mrb[6].mxu1 }
  0xf0   :  { %v389_v36 = vpack.c.bf16 %v260_v29, %v260_v29  ;;  %v261_v38 = vmax.f32 %v465_v35, 0.0  ;;  %v210_v40 = vpop.f32.mrb[7].mxu0  ;;  %v397_v41 = vpack.c.bf16 %v268_v32, %v268_v32  ;;  %v269_v43 = vmax.f32 %v473_v39, 0.0  ;;  %v242_v45 = vpop.f32.mrb[7].mxu1 }
  0xf1   :  { %v387_v42 = vpack.c.bf16 %v258_v33, %v258_v33  ;;  %v259_v44 = vmax.f32 %v210_v40, 0.0  ;;  %v395_v46 = vpack.c.bf16 %v266_v37, %v266_v37  ;;  %v267_v48 = vmax.f32 %v242_v45, 0.0 }
  0xf2   :  { %341 = vst.msk [vmem:[%s613_s2 + $0x18] sm:$0xf] %vm334_vm2, %v389_v36  ;;  %v390_v47 = vpack.c.bf16 %v261_v38, %v261_v38  ;;  %349 = vst.msk [vmem:[%s613_s2 + $0x38] sm:$0xf] %vm334_vm2, %v397_v41  ;;  %v398_v49 = vpack.c.bf16 %v269_v43, %v269_v43 }
  0xf3   :  { %339 = vst.msk [vmem:[%s613_s2 + $0x10] sm:$0xf] %vm334_vm2, %v387_v42  ;;  %v388_v50 = vpack.c.bf16 %v259_v44, %v259_v44  ;;  %347 = vst.msk [vmem:[%s613_s2 + $0x30] sm:$0xf] %vm334_vm2, %v395_v46  ;;  %v396_v51 = vpack.c.bf16 %v267_v48, %v267_v48 }
  0xf4   :  { %342 = vst.msk [vmem:[%s613_s2 + $0x1c] sm:$0xf] %vm334_vm2, %v390_v47  ;;  %350 = vst.msk [vmem:[%s613_s2 + $0x3c] sm:$0xf] %vm334_vm2, %v398_v49 }
  0xf5   :  { %340 = vst.msk [vmem:[%s613_s2 + $0x14] sm:$0xf] %vm334_vm2, %v388_v50  ;;  %348 = vst.msk [vmem:[%s613_s2 + $0x34] sm:$0xf] %vm334_vm2, %v396_v51 }

// kernel: unet_innermost_forward.4
= control target key start
LH: loop header
LB: loop body
LE: loop exit
PB: predicated region body
PF: predicated region fallthrough
CT: control target
= control target key end

     0   :  { %s841_s12 = smov 0   ;;  %s843_s13 = smov 0   ;;  %s978_s0 = inlined_call_operand.vmem [shape: bf16[4,128,32], index: 0, kind: input, shape index: {}]   ;;  %s979_s1 = inlined_call_operand.vmem [shape: bf16[4,32,4], index: 1, kind: input, shape index: {}]   ;;  %s980_s2 = inlined_call_operand.vmem [shape: f32[4,128,4], index: 2, kind: output, shape index: {0}]   ;;  %s981_s3 = inlined_call_operand.vmem [shape: f32[4,1,2,4], index: 3, kind: output, shape index: {1}]  }
   0x1   :  { %s845_s14 = smov 0  }
   0x2 LB: > { %s26_s15 = sadd.s32 1, %s815_s13  ;;  %p698_p0 = scmp.ge.s32.totalorder %s819_s14, 1  ;;  %s819_s14 = sphi %s845_s14, %s14_s14   ;;  %s815_s13 = sphi %s843_s13, %s983_s13   ;;  %s811_s12 = sphi %s841_s12, %s982_s12  }
   0x3   : > { %p28_p1 = scmp.ge.s32.totalorder %s26_s15, 4  ;;  %p173_p2 = scmp.lt.s32.totalorder %s819_s14, 5 }
   0x5   : > { %s985_s15 = smov (%p28_p1, %s26_s15), 0  ;;  %p174_p3 = pnand %p698_p0, %p173_p2 }
   0x6   : > { %p218_p4 = scmp.lt.s32.totalorder (!%p174_p3), %s811_s12, 3  ;;  %vm322_vm0 = vcmask (!%p174_p3), 261120   ;;  %vm444_vm1 = vcmask (!%p174_p3), 31744   ;;  %vm498_vm2 = vcmask (!%p174_p3), 24576  }
   0x7   : > { %177 = sbr.rel (%p174_p3) target bundleno = 287 (0x11f), region = 28 }
   0xe   : > { %s987_s12 = smov (!%p218_p4, %s811_s12), 3 }
   0xf   : > { %s726_s16 = sshll.u32 %s987_s12, 6  ;;  %s727_s17 = sshll.u32 %s987_s12, 4 }
  0x10   : > { %s225_s20 = scalar_lea.vmem %s978_s0, %s726_s16  ;;  %s231_s23 = scalar_lea.vmem %s979_s1, %s727_s17 }
  0x11   : > { %v787_v0 = vld [vmem:[%s231_s23] sm:$0xff]   ;;  %v788_v1 = vld [vmem:[%s231_s23 + $0x8] sm:$0xff]   ;;  %v791_v4 = vld [vmem:[%s225_s20 + $0x10] sm:$0xff]   ;;  %s728_s24 = sshll.u32 %s987_s12, 7  ;;  %s705_s28 = sshll.u32 %s987_s12, 1 }
  0x12   : > { %739 = vmatprep.subr.bf16.mxu0 %v787_v0  ;;  %v789_v2 = vld [vmem:[%s225_s20] sm:$0xff]   ;;  %759 = vmatprep.subr.bf16.mxu1 %v787_v0  ;;  %v790_v3 = vld [vmem:[%s225_s20 + $0x8] sm:$0xff]   ;;  %v795_v7 = vld [vmem:[%s225_s20 + $0x30] sm:$0xff]   ;;  %s881_s27 = scalar_lea.vmem %s980_s2, %s728_s24  ;;  %s248_s4 = scalar_lea.vmem %s981_s3, %s705_s28 }
  0x13   : > { %740 = vmatpush3.bf16.msra.mxu0 %v787_v0  ;;  %761 = vmatpush3.bf16.msra.mxu1 %v787_v0  ;;  %v793_v5 = vld [vmem:[%s225_s20 + $0x20] sm:$0xff]   ;;  %v794_v6 = vld [vmem:[%s225_s20 + $0x28] sm:$0xff]   ;;  %v792_v8 = vld [vmem:[%s225_s20 + $0x18] sm:$0xff]  }
  0x14   : > { %741 = vmatprep.subr.bf16.mxu0 %v788_v1  ;;  %743 = vmatprep.mubr.msk.bf16.mxu0 %vm322_vm0, %v789_v2  ;;  %v796_v9 = vld [vmem:[%s225_s20 + $0x38] sm:$0xff]  }
  0x15   : > { %760 = vmatprep.subr.bf16.mxu1 %v788_v1  ;;  %751 = vmatprep.mubr.msk.bf16.mxu1 %vm322_vm0, %v793_v5 }
  0x17   : > { %742 = vmatpush3.bf16.msra.mxu0 %v788_v1  ;;  %762 = vmatpush3.bf16.msra.mxu1 %v788_v1 }
  0x1a   : > { %744 = vmatmul.mubr.msk.bf16.vlgmr.msra.gmra.mrb[0].mxu0 %vm322_vm0, %v790_v3  ;;  %752 = vmatmul.mubr.msk.bf16.vlgmr.msra.gmra.mrb[0].mxu1 %vm322_vm0, %v794_v6 }
  0x1b   : > { %747 = vmatprep.mubr.msk.bf16.mxu0 %vm322_vm0, %v791_v4  ;;  %755 = vmatprep.mubr.msk.bf16.mxu1 %vm322_vm0, %v795_v7 }
  0x22   : > { %748 = vmatmul.mubr.msk.bf16.gmra.mrb[4].mxu0 %vm322_vm0, %v792_v8  ;;  %756 = vmatmul.mubr.msk.bf16.gmra.mrb[4].mxu1 %vm322_vm0, %v796_v9 }
  0xed   : > { %v745_v10 = vpop.f32.mrb[0].mxu0  ;;  %v883_v11 = vpop.f32.mrb[0].mxu1 }
  0xee   : > { %447 = vst.msk [vmem:[%s881_s27 + $0x10] sm:$0xff] %vm444_vm1, %v745_v10  ;;  %v381_v12 = vpop.f32.mrb[1].mxu0  ;;  %455 = vst.msk [vmem:[%s881_s27 + $0x50] sm:$0xff] %vm444_vm1, %v883_v11  ;;  %v413_v13 = vpop.f32.mrb[1].mxu1  ;;  %v502_v19 = vmul.f32 %v745_v10, %v745_v10  ;;  %v464_v24 = vsel %vm444_vm1, %v745_v10, 0.0  ;;  %v510_v5 = vmul.f32 %v883_v11, %v883_v11  ;;  %v480_v9 = vsel %vm444_vm1, %v883_v11, 0.0 }
  0xef   : > { %445 = vst.msk [vmem:[%s881_s27] sm:$0xff] %vm444_vm1, %v381_v12  ;;  %v500_v14 = vmul.f32 %v381_v12, %v381_v12  ;;  %v746_v15 = vpop.f32.mrb[2].mxu0  ;;  %453 = vst.msk [vmem:[%s881_s27 + $0x40] sm:$0xff] %vm444_vm1, %v413_v13  ;;  %v894_v16 = vpop.f32.mrb[2].mxu1  ;;  %v461_v20 = vsel %vm444_vm1, %v381_v12, 0.0  ;;  %v508_v56 = vmul.f32 %v413_v13, %v413_v13  ;;  %v476_v61 = vsel %vm444_vm1, %v413_v13, 0.0 }
  0xf0   : > { %448 = vst.msk [vmem:[%s881_s27 + $0x18] sm:$0xff] %vm444_vm1, %v746_v15  ;;  %v384_v17 = vpop.f32.mrb[3].mxu0  ;;  %456 = vst.msk [vmem:[%s881_s27 + $0x58] sm:$0xff] %vm444_vm1, %v894_v16  ;;  %v416_v18 = vpop.f32.mrb[3].mxu1  ;;  %v503_v26 = vmul.f32 %v746_v15, %v746_v15  ;;  %v519_v30 = vsel %vm444_vm1, %v502_v19, 0.0  ;;  %v466_v31 = vsel %vm444_vm1, %v746_v15, 0.0  ;;  %v511_v10 = vmul.f32 %v894_v16, %v894_v16 }
  0xf1   : > { %446 = vst.msk [vmem:[%s881_s27 + $0x8] sm:$0xff] %vm444_vm1, %v384_v17  ;;  %v462_v21 = vsel %vm444_vm1, %v384_v17, 0.0  ;;  %v501_v22 = vmul.f32 %v384_v17, %v384_v17  ;;  %454 = vst.msk [vmem:[%s881_s27 + $0x48] sm:$0xff] %vm444_vm1, %v416_v18  ;;  %v516_v25 = vsel %vm444_vm1, %v500_v14, 0.0  ;;  %v531_v1 = vsel %vm444_vm1, %v508_v56, 0.0 }
  0xf2   : > { %v463_v23 = vadd.f32 %v462_v21, %v461_v20  ;;  %v521_v38 = vsel %vm444_vm1, %v503_v26, 0.0  ;;  %v509_v2 = vmul.f32 %v416_v18, %v416_v18  ;;  %v478_v6 = vsel %vm444_vm1, %v416_v18, 0.0 }
  0xf3   : > { %v517_v27 = vsel %vm444_vm1, %v501_v22, 0.0  ;;  %v535_v17 = vsel %vm444_vm1, %v510_v5, 0.0  ;;  %v482_v19 = vsel %vm444_vm1, %v894_v16, 0.0  ;;  %v537_v22 = vsel %vm444_vm1, %v511_v10, 0.0 }
  0xf4   : > { %v465_v28 = vadd.f32 %v464_v24, %v463_v23  ;;  %v518_v29 = vadd.f32 %v517_v27, %v516_v25  ;;  %v533_v12 = vsel %vm444_vm1, %v509_v2, 0.0 }
  0xf5   : > { %v749_v32 = vpop.f32.mrb[4].mxu0  ;;  %v912_v33 = vpop.f32.mrb[4].mxu1 }
  0xf6   : > { %v520_v34 = vadd.f32 %v519_v30, %v518_v29  ;;  %451 = vst.msk [vmem:[%s881_s27 + $0x30] sm:$0xff] %vm444_vm1, %v749_v32  ;;  %v397_v35 = vpop.f32.mrb[5].mxu0  ;;  %v467_v36 = vadd.f32 %v466_v31, %v465_v28  ;;  %459 = vst.msk [vmem:[%s881_s27 + $0x70] sm:$0xff] %vm444_vm1, %v912_v33  ;;  %v429_v37 = vpop.f32.mrb[5].mxu1  ;;  %v506_v47 = vmul.f32 %v749_v32, %v749_v32  ;;  %v472_v53 = vsel %vm444_vm1, %v749_v32, 0.0 }
  0xf7   : > { %449 = vst.msk [vmem:[%s881_s27 + $0x20] sm:$0xff] %vm444_vm1, %v397_v35  ;;  %v468_v39 = vsel %vm444_vm1, %v397_v35, 0.0  ;;  %v504_v40 = vmul.f32 %v397_v35, %v397_v35  ;;  %v750_v41 = vpop.f32.mrb[6].mxu0  ;;  %457 = vst.msk [vmem:[%s881_s27 + $0x60] sm:$0xff] %vm444_vm1, %v429_v37  ;;  %v758_v42 = vpop.f32.mrb[6].mxu1  ;;  %v512_v13 = vmul.f32 %v429_v37, %v429_v37  ;;  %v484_v18 = vsel %vm444_vm1, %v429_v37, 0.0 }
  0xf8   : > { %v469_v43 = vadd.f32 %v468_v39, %v467_v36  ;;  %v522_v44 = vadd.f32 %v521_v38, %v520_v34  ;;  %452 = vst.msk [vmem:[%s881_s27 + $0x38] sm:$0xff] %vm444_vm1, %v750_v41  ;;  %v400_v45 = vpop.f32.mrb[7].mxu0  ;;  %460 = vst.msk [vmem:[%s881_s27 + $0x78] sm:$0xff] %vm444_vm1, %v758_v42  ;;  %v432_v46 = vpop.f32.mrb[7].mxu1  ;;  %v507_v54 = vmul.f32 %v750_v41, %v750_v41  ;;  %v527_v59 = vsel %vm444_vm1, %v506_v47, 0.0 }
  0xf9   : > { %v523_v48 = vsel %vm444_vm1, %v504_v40, 0.0  ;;  %450 = vst.msk [vmem:[%s881_s27 + $0x28] sm:$0xff] %vm444_vm1, %v400_v45  ;;  %v470_v49 = vsel %vm444_vm1, %v400_v45, 0.0  ;;  %v505_v50 = vmul.f32 %v400_v45, %v400_v45  ;;  %458 = vst.msk [vmem:[%s881_s27 + $0x68] sm:$0xff] %vm444_vm1, %v432_v46  ;;  %v474_v60 = vsel %vm444_vm1, %v750_v41, 0.0 }
  0xfa   : > { %v524_v51 = vadd.f32 %v523_v48, %v522_v44  ;;  %v471_v52 = vadd.f32 %v470_v49, %v469_v43  ;;  %v529_v0 = vsel %vm444_vm1, %v507_v54, 0.0  ;;  %v539_v11 = vsel %vm444_vm1, %v512_v13, 0.0 }
  0xfb   : > { %v525_v55 = vsel %vm444_vm1, %v505_v50, 0.0  ;;  %v513_v23 = vmul.f32 %v432_v46, %v432_v46  ;;  %v514_v26 = vmul.f32 %v912_v33, %v912_v33  ;;  %v486_v27 = vsel %vm444_vm1, %v432_v46, 0.0 }
  0xfc   : > { %v473_v57 = vadd.f32 %v472_v53, %v471_v52  ;;  %v526_v58 = vadd.f32 %v525_v55, %v524_v51  ;;  %v488_v16 = vsel %vm444_vm1, %v912_v33, 0.0  ;;  %v515_v30 = vmul.f32 %v758_v42, %v758_v42 }
  0xfd   : > { %v541_v31 = vsel %vm444_vm1, %v513_v23, 0.0  ;;  %v543_v35 = vsel %vm444_vm1, %v514_v26, 0.0  ;;  %v490_v36 = vsel %vm444_vm1, %v758_v42, 0.0 }
  0xfe   : > { %v528_v62 = vadd.f32 %v527_v59, %v526_v58  ;;  %v475_v63 = vadd.f32 %v474_v60, %v473_v57  ;;  %v545_v39 = vsel %vm444_vm1, %v515_v30, 0.0 }
 0x100   : > { %v477_v3 = vadd.f32 %v476_v61, %v475_v63  ;;  %v530_v4 = vadd.f32 %v529_v0, %v528_v62 }
 0x102   : > { %v532_v7 = vadd.f32 %v531_v1, %v530_v4  ;;  %v479_v8 = vadd.f32 %v478_v6, %v477_v3 }
 0x104   : > { %v481_v14 = vadd.f32 %v480_v9, %v479_v8  ;;  %v534_v15 = vadd.f32 %v533_v12, %v532_v7 }
 0x106   : > { %v536_v20 = vadd.f32 %v535_v17, %v534_v15  ;;  %v483_v21 = vadd.f32 %v482_v19, %v481_v14 }
 0x108   : > { %v485_v24 = vadd.f32 %v484_v18, %v483_v21  ;;  %v538_v25 = vadd.f32 %v537_v22, %v536_v20 }
 0x10a   : > { %v540_v28 = vadd.f32 %v539_v11, %v538_v25  ;;  %v487_v29 = vadd.f32 %v486_v27, %v485_v24 }
 0x10c   : > { %v489_v32 = vadd.f32 %v488_v16, %v487_v29  ;;  %v542_v34 = vadd.f32 %v541_v31, %v540_v28 }
 0x10e   : > { %v491_v37 = vadd.f32 %v490_v36, %v489_v32  ;;  %v544_v38 = vadd.f32 %v543_v35, %v542_v34 }
 0x110   : > { %v492_v40 = vrot.slane %v491_v37, 4  ;;  %v546_v41 = vadd.f32 %v545_v39, %v544_v38 }
 0x112   : > { %v493_v43 = vadd.f32 %v492_v40, %v491_v37  ;;  %v547_v44 = vrot.slane %v546_v41, 4 }
 0x114   : > { %v494_v45 = vrot.slane %v493_v43, 2  ;;  %v548_v33 = vadd.f32 %v547_v44, %v546_v41 }
 0x116   : > { %v495_v46 = vadd.f32 %v494_v45, %v493_v43  ;;  %v549_v47 = vrot.slane %v548_v33, 2 }
 0x118   : > { %v496_v48 = vrot.slane %v495_v46, 1  ;;  %v550_v49 = vadd.f32 %v549_v47, %v548_v33 }
 0x11a   : > { %v497_v42 = vadd.f32 %v496_v48, %v495_v46  ;;  %v551_v50 = vrot.slane %v550_v49, 1 }
 0x11c   : > { %499 = vst.msk [vmem:[%s248_s4] sm:$0x1] %vm498_vm2, %v497_v42  ;;  %v552_v51 = vadd.f32 %v551_v50, %v550_v49 }
 0x11e   : > { %553 = vst.msk [vmem:[%s248_s4 + $0x1] sm:$0x1] %vm498_vm2, %v552_v51 }
 0x11f PF: > { %s14_s14 = sadd.s32 1, %s819_s14   ;;  %s982_s12 = smov %s815_s13 }
 0x120   : > { %p11_p5 = scmp.ge.s32.totalorder %s14_s14, 6   ;;  %s983_s13 = smov %s985_s15 }
 0x122   :  { %13 = sbr.rel (!%p11_p5) target bundleno = 2 (0x2), region = 73 }

// kernel: unet_innermost_forward.5
= control target key start
LH: loop header
LB: loop body
LE: loop exit
PB: predicated region body
PF: predicated region fallthrough
CT: control target
= control target key end

     0   :  { %s647_s15 = smov 0   ;;  %s649_s16 = smov 0   ;;  %s843_s0 = inlined_call_operand.vmem [shape: f32[4,128,4], index: 0, kind: input, shape index: {}]   ;;  %s844_s1 = inlined_call_operand.vmem [shape: f32[4,128,4], index: 1, kind: input, shape index: {}]   ;;  %s845_s2 = inlined_call_operand.vmem [shape: f32[1,4], index: 2, kind: input, shape index: {}]   ;;  %s846_s3 = inlined_call_operand.vmem [shape: f32[1,4], index: 3, kind: input, shape index: {}]   ;;  %s847_s4 = inlined_call_operand.vmem [shape: f32[4,128,8], index: 4, kind: output, shape index: {}]  }
   0x1   :  { %s651_s17 = smov 0  }
   0x2 LB: > { %s26_s18 = sadd.s32 1, %s615_s16  ;;  %p558_p0 = scmp.ge.s32.totalorder %s619_s17, 1  ;;  %s619_s17 = sphi %s651_s17, %s14_s17   ;;  %s615_s16 = sphi %s649_s16, %s849_s16   ;;  %s611_s15 = sphi %s647_s15, %s848_s15  }
   0x3   : > { %p28_p1 = scmp.ge.s32.totalorder %s26_s18, 4  ;;  %p200_p2 = scmp.lt.s32.totalorder %s619_s17, 5 }
   0x5   : > { %s851_s18 = smov (%p28_p1, %s26_s18), 0  ;;  %p201_p3 = pnand %p558_p0, %p200_p2 }
   0x6   : > { %p244_p4 = scmp.lt.s32.totalorder (!%p201_p3), %s611_s15, 3  ;;  %v668_v0 = vld [vmem:[%s845_s2] ss:$0 sm:$0xff] (!%p201_p3)  ;;  %vm351_vm0 = vcmask (!%p201_p3), 31744   ;;  %s621_s7 = smov (!%p201_p3), 4   ;;  %vm432_vm1 = vcmask (!%p201_p3), 64544  }
   0x7   : > { %204 = sbr.rel (%p201_p3) target bundleno = 166 (0xa6), region = 36  ;;  %v678_v1 = vld [vmem:[%s846_s3] ss:$0 sm:$0xff] (!%p201_p3) }
   0xe   : > { %s853_s15 = smov (!%p244_p4, %s611_s15), 3 }
   0xf   : > { %s569_s19 = sshll.u32 %s853_s15, 7 }
  0x10   : > { %s673_s24 = scalar_lea.vmem %s843_s0, %s569_s19  ;;  %s691_s29 = scalar_lea.vmem %s844_s1, %s569_s19 }
  0x11   : > { %v275_v2 = vld [vmem:[%s673_s24 + $0x10] sm:$0xff]  ;;  %v273_v3 = vld [vmem:[%s673_s24] sm:$0xff]  ;;  %v276_v4 = vld [vmem:[%s673_s24 + $0x18] sm:$0xff]  ;;  %s698_s6 = scalar_lea.vmem %s847_s4, %s569_s19 }
  0x12   : > { %v298_v5 = vmul.f32 %v668_v0, %v275_v2  ;;  %v296_v6 = vmul.f32 %v668_v0, %v273_v3  ;;  %v299_v7 = vmul.f32 %v668_v0, %v276_v4  ;;  %v274_v8 = vld [vmem:[%s673_s24 + $0x8] sm:$0xff]  ;;  %v277_v11 = vld [vmem:[%s673_s24 + $0x20] sm:$0xff]  ;;  %v280_v15 = vld [vmem:[%s673_s24 + $0x38] sm:$0xff] }
  0x13   : > { %v278_v9 = vld [vmem:[%s673_s24 + $0x28] sm:$0xff]  ;;  %v297_v10 = vmul.f32 %v668_v0, %v274_v8  ;;  %v300_v18 = vmul.f32 %v668_v0, %v277_v11  ;;  %v279_v19 = vld [vmem:[%s673_s24 + $0x30] sm:$0xff]  ;;  %v335_v21 = vld [vmem:[%s691_s29] sm:$0xff]  ;;  %v303_v27 = vmul.f32 %v668_v0, %v280_v15 }
  0x14   : > { %v321_v12 = vadd.f32 %v678_v1, %v298_v5  ;;  %v319_v13 = vadd.f32 %v678_v1, %v296_v6  ;;  %v301_v14 = vmul.f32 %v668_v0, %v278_v9  ;;  %v322_v16 = vadd.f32 %v678_v1, %v299_v7  ;;  %v337_v20 = vld [vmem:[%s691_s29 + $0x10] sm:$0xff]  ;;  %v338_v22 = vld [vmem:[%s691_s29 + $0x18] sm:$0xff]  ;;  %v336_v23 = vld [vmem:[%s691_s29 + $0x8] sm:$0xff]  ;;  %352 = vst.msk [vmem:[%s698_s6] sm:$0xff] %vm351_vm0, %v335_v21 }
  0x15   : > { %v320_v17 = vadd.f32 %v678_v1, %v297_v10  ;;  %354 = vst.msk [vmem:[%s698_s6 + $0x10] sm:$0xff] %vm351_vm0, %v337_v20  ;;  %355 = vst.msk [vmem:[%s698_s6 + $0x18] sm:$0xff] %vm351_vm0, %v338_v22  ;;  %v340_v24 = vld [vmem:[%s691_s29 + $0x28] sm:$0xff]  ;;  %v339_v25 = vld [vmem:[%s691_s29 + $0x20] sm:$0xff]  ;;  %v323_v32 = vadd.f32 %v678_v1, %v300_v18  ;;  %v302_v33 = vmul.f32 %v668_v0, %v279_v19 }
  0x16   : > { %388 = vrot.lane.b32.xlu1 %v321_v12, %s621_s7  ;;  %384 = vrot.lane.b32.xlu0 %v319_v13, %s621_s7  ;;  %353 = vst.msk [vmem:[%s698_s6 + $0x8] sm:$0xff] %vm351_vm0, %v336_v23  ;;  %v342_v26 = vld [vmem:[%s691_s29 + $0x38] sm:$0xff]  ;;  %v324_v31 = vadd.f32 %v678_v1, %v301_v14  ;;  %v326_v38 = vadd.f32 %v678_v1, %v303_v27 }
  0x17   : > { %357 = vst.msk [vmem:[%s698_s6 + $0x28] sm:$0xff] %vm351_vm0, %v340_v24  ;;  %356 = vst.msk [vmem:[%s698_s6 + $0x20] sm:$0xff] %vm351_vm0, %v339_v25  ;;  %v341_v28 = vld [vmem:[%s691_s29 + $0x30] sm:$0xff]  ;;  %v344_v29 = vld [vmem:[%s691_s29 + $0x48] sm:$0xff]  ;;  %v325_v40 = vadd.f32 %v678_v1, %v302_v33 }
  0x18   : > { %359 = vst.msk [vmem:[%s698_s6 + $0x38] sm:$0xff] %vm351_vm0, %v342_v26  ;;  %v343_v30 = vld [vmem:[%s691_s29 + $0x40] sm:$0xff]  ;;  %358 = vst.msk [vmem:[%s698_s6 + $0x30] sm:$0xff] %vm351_vm0, %v341_v28  ;;  %v346_v34 = vld [vmem:[%s691_s29 + $0x58] sm:$0xff] }
  0x19   : > { %361 = vst.msk [vmem:[%s698_s6 + $0x48] sm:$0xff] %vm351_vm0, %v344_v29  ;;  %360 = vst.msk [vmem:[%s698_s6 + $0x40] sm:$0xff] %vm351_vm0, %v343_v30  ;;  %v282_v35 = vld [vmem:[%s673_s24 + $0x48] sm:$0xff]  ;;  %v281_v36 = vld [vmem:[%s673_s24 + $0x40] sm:$0xff] }
  0x1a   : > { %390 = vrot.lane.b32.xlu1 %v322_v16, %s621_s7  ;;  %386 = vrot.lane.b32.xlu0 %v320_v17, %s621_s7  ;;  %363 = vst.msk [vmem:[%s698_s6 + $0x58] sm:$0xff] %vm351_vm0, %v346_v34  ;;  %v345_v37 = vld [vmem:[%s691_s29 + $0x50] sm:$0xff]  ;;  %v305_v41 = vmul.f32 %v668_v0, %v282_v35  ;;  %v304_v42 = vmul.f32 %v668_v0, %v281_v36 }
  0x1b   : > { %362 = vst.msk [vmem:[%s698_s6 + $0x50] sm:$0xff] %vm351_vm0, %v345_v37  ;;  %v348_v39 = vld [vmem:[%s691_s29 + $0x68] sm:$0xff]  ;;  %v284_v43 = vld [vmem:[%s673_s24 + $0x58] sm:$0xff]  ;;  %v283_v44 = vld [vmem:[%s673_s24 + $0x50] sm:$0xff] }
  0x1c   : > { %365 = vst.msk [vmem:[%s698_s6 + $0x68] sm:$0xff] %vm351_vm0, %v348_v39  ;;  %v347_v45 = vld [vmem:[%s691_s29 + $0x60] sm:$0xff]  ;;  %v307_v46 = vmul.f32 %v668_v0, %v284_v43  ;;  %v350_v47 = vld [vmem:[%s691_s29 + $0x78] sm:$0xff]  ;;  %v328_v48 = vadd.f32 %v678_v1, %v305_v41  ;;  %v327_v49 = vadd.f32 %v678_v1, %v304_v42  ;;  %v306_v50 = vmul.f32 %v668_v0, %v283_v44  ;;  %v286_v51 = vld [vmem:[%s673_s24 + $0x68] sm:$0xff] }
  0x1d   : > { %364 = vst.msk [vmem:[%s698_s6 + $0x60] sm:$0xff] %vm351_vm0, %v347_v45  ;;  %367 = vst.msk [vmem:[%s698_s6 + $0x78] sm:$0xff] %vm351_vm0, %v350_v47  ;;  %v285_v52 = vld [vmem:[%s673_s24 + $0x60] sm:$0xff]  ;;  %v349_v53 = vld [vmem:[%s691_s29 + $0x70] sm:$0xff]  ;;  %v309_v54 = vmul.f32 %v668_v0, %v286_v51 }
  0x1e   : > { %394 = vrot.lane.b32.xlu1 %v324_v31, %s621_s7  ;;  %392 = vrot.lane.b32.xlu0 %v323_v32, %s621_s7  ;;  %366 = vst.msk [vmem:[%s698_s6 + $0x70] sm:$0xff] %vm351_vm0, %v349_v53  ;;  %v330_v55 = vadd.f32 %v678_v1, %v307_v46  ;;  %v329_v56 = vadd.f32 %v678_v1, %v306_v50  ;;  %v288_v58 = vld [vmem:[%s673_s24 + $0x78] sm:$0xff] }
  0x1f   : > { %v308_v57 = vmul.f32 %v668_v0, %v285_v52  ;;  %v287_v59 = vld [vmem:[%s673_s24 + $0x70] sm:$0xff]  ;;  %v311_v60 = vmul.f32 %v668_v0, %v288_v58  ;;  %v332_v61 = vadd.f32 %v678_v1, %v309_v54 }
  0x20   : > { %v310_v63 = vmul.f32 %v668_v0, %v287_v59 }
  0x21   : > { %v331_v62 = vadd.f32 %v678_v1, %v308_v57  ;;  %v334_v2 = vadd.f32 %v678_v1, %v311_v60 }
  0x22   : > { %398 = vrot.lane.b32.xlu1 %v326_v38, %s621_s7  ;;  %396 = vrot.lane.b32.xlu0 %v325_v40, %s621_s7  ;;  %v333_v3 = vadd.f32 %v678_v1, %v310_v63 }
  0x26   : > { %402 = vrot.lane.b32.xlu1 %v328_v48, %s621_s7  ;;  %400 = vrot.lane.b32.xlu0 %v327_v49, %s621_s7 }
  0x2a   : > { %406 = vrot.lane.b32.xlu1 %v330_v55, %s621_s7  ;;  %404 = vrot.lane.b32.xlu0 %v329_v56, %s621_s7 }
  0x2e   : > { %410 = vrot.lane.b32.xlu1 %v332_v61, %s621_s7  ;;  %408 = vrot.lane.b32.xlu0 %v331_v62, %s621_s7 }
  0x32   : > { %414 = vrot.lane.b32.xlu1 %v334_v2, %s621_s7  ;;  %412 = vrot.lane.b32.xlu0 %v333_v3, %s621_s7 }
  0x88   : > { %v389_v4 = vpop.permute.xlu1 %388  ;;  %v385_v5 = vpop.permute.xlu0 %384 }
  0x89   : > { %435 = vst.msk [vmem:[%s698_s6 + $0x10] sm:$0xff] %vm432_vm1, %v389_v4  ;;  %433 = vst.msk [vmem:[%s698_s6] sm:$0xff] %vm432_vm1, %v385_v5 }
  0x8c   : > { %v391_v0 = vpop.permute.xlu1 %390  ;;  %v387_v6 = vpop.permute.xlu0 %386 }
  0x8d   : > { %436 = vst.msk [vmem:[%s698_s6 + $0x18] sm:$0xff] %vm432_vm1, %v391_v0  ;;  %434 = vst.msk [vmem:[%s698_s6 + $0x8] sm:$0xff] %vm432_vm1, %v387_v6 }
  0x90   : > { %v395_v1 = vpop.permute.xlu1 %394  ;;  %v393_v7 = vpop.permute.xlu0 %392 }
  0x91   : > { %438 = vst.msk [vmem:[%s698_s6 + $0x28] sm:$0xff] %vm432_vm1, %v395_v1  ;;  %437 = vst.msk [vmem:[%s698_s6 + $0x20] sm:$0xff] %vm432_vm1, %v393_v7 }
  0x94   : > { %v399_v8 = vpop.permute.xlu1 %398  ;;  %v397_v9 = vpop.permute.xlu0 %396 }
  0x95   : > { %440 = vst.msk [vmem:[%s698_s6 + $0x38] sm:$0xff] %vm432_vm1, %v399_v8  ;;  %439 = vst.msk [vmem:[%s698_s6 + $0x30] sm:$0xff] %vm432_vm1, %v397_v9 }
  0x98   : > { %v403_v10 = vpop.permute.xlu1 %402  ;;  %v401_v11 = vpop.permute.xlu0 %400 }
  0x99   : > { %442 = vst.msk [vmem:[%s698_s6 + $0x48] sm:$0xff] %vm432_vm1, %v403_v10  ;;  %441 = vst.msk [vmem:[%s698_s6 + $0x40] sm:$0xff] %vm432_vm1, %v401_v11 }
  0x9c   : > { %v407_v12 = vpop.permute.xlu1 %406  ;;  %v405_v13 = vpop.permute.xlu0 %404 }
  0x9d   : > { %444 = vst.msk [vmem:[%s698_s6 + $0x58] sm:$0xff] %vm432_vm1, %v407_v12  ;;  %443 = vst.msk [vmem:[%s698_s6 + $0x50] sm:$0xff] %vm432_vm1, %v405_v13 }
  0xa0   : > { %v411_v14 = vpop.permute.xlu1 %410  ;;  %v409_v15 = vpop.permute.xlu0 %408 }
  0xa1   : > { %446 = vst.msk [vmem:[%s698_s6 + $0x68] sm:$0xff] %vm432_vm1, %v411_v14  ;;  %445 = vst.msk [vmem:[%s698_s6 + $0x60] sm:$0xff] %vm432_vm1, %v409_v15 }
  0xa4   : > { %v415_v16 = vpop.permute.xlu1 %414  ;;  %v413_v17 = vpop.permute.xlu0 %412 }
  0xa5   : > { %448 = vst.msk [vmem:[%s698_s6 + $0x78] sm:$0xff] %vm432_vm1, %v415_v16  ;;  %447 = vst.msk [vmem:[%s698_s6 + $0x70] sm:$0xff] %vm432_vm1, %v413_v17 }
  0xa6 PF: > { %s14_s17 = sadd.s32 1, %s619_s17   ;;  %s848_s15 = smov %s615_s16 }
  0xa7   : > { %p11_p5 = scmp.ge.s32.totalorder %s14_s17, 6   ;;  %s849_s16 = smov %s851_s18 }
  0xa9   :  { %13 = sbr.rel (!%p11_p5) target bundleno = 2 (0x2), region = 69 }

</bundles_post_ra>
